<compile_context>
chip_gen: v7x
topology: tpu7x:2x2x1
jax: 0.10.0
libtpu: 0.0.40
codegen_flags: <defaults>
</compile_context>

<pallas_src>
import functools

import jax
import jax.numpy as jnp
import numpy as np
from jax.experimental import pallas as pl
from jax.experimental.pallas import tpu as pltpu

_LANE = 128
_SUBLANE = 8


def _onehot_probs_kernel(logits_ref, out_ref, *, n_valid: int):
    """softmax -> clamp(min=0.01) -> renormalize. Rows = encoders, lanes = categories."""
    x = logits_ref[...]                                             # (Bt, Np) f32
    bt, n_pad = x.shape

    # Mask for the real categories (lanes beyond n_valid are layout padding).
    lane = jax.lax.broadcasted_iota(jnp.int32, (bt, n_pad), dimension=1)
    mask = lane < n_valid
    x = jnp.where(mask, x, jnp.float32(-1e30))

    # Numerically stable softmax along the lane axis (XLU reductions, EUP exp).
    m = jnp.max(x, axis=-1, keepdims=True)
    e = jnp.exp(x - m)                                              # pad lanes -> 0
    p = e * pl.reciprocal(jnp.sum(e, axis=-1, keepdims=True), approx=True)

    # 1% floor on real lanes only; keep pad lanes at exactly 0 so they take no mass.
    p = jnp.where(mask, jnp.maximum(p, jnp.float32(0.01)), jnp.float32(0.0))

    # Renormalize (matches the module: values may end up slightly below 1% after this).
    out_ref[...] = p * pl.reciprocal(jnp.sum(p, axis=-1, keepdims=True), approx=True)


def onehot_encoder_forward(logits: jax.Array, *, batch_tile: int = 256) -> jax.Array:
    """Pallas equivalent of OneHotEncoder.forward().

    Accepts a single encoder's logits (N,) or a batch of encoders (B, N); each
    row is normalized independently. Returns the same shape as the input.
    """
    # TODO(synk): for very large N (thousands+ of discrete values) tile the lane
    # axis with an online/two-pass softmax instead of one full-width block.
    squeeze = logits.ndim == 1
    x = logits[None, :] if squeeze else logits
    b, n = x.shape

    # Lane-dense / vreg-aligned layout: pad categories to a multiple of 128 lanes,
    # encoders to a multiple of 8 sublanes (and of the batch tile).
    n_pad = ((n + _LANE - 1) // _LANE) * _LANE
    bt = min(batch_tile, ((b + _SUBLANE - 1) // _SUBLANE) * _SUBLANE)
    bt = ((bt + _SUBLANE - 1) // _SUBLANE) * _SUBLANE
    b_pad = ((b + bt - 1) // bt) * bt

    x = x.astype(jnp.float32)
    x = jnp.pad(x, ((0, b_pad - b), (0, n_pad - n)))  # zero pad; kernel masks pad lanes

    out = pl.pallas_call(
        functools.partial(_onehot_probs_kernel, n_valid=n),
        out_shape=jax.ShapeDtypeStruct((b_pad, n_pad), jnp.float32),
        grid=(b_pad // bt,),
        in_specs=[pl.BlockSpec((bt, n_pad), lambda i: (i, 0))],
        out_specs=pl.BlockSpec((bt, n_pad), lambda i: (i, 0)),
        compiler_params=pltpu.CompilerParams(dimension_semantics=("parallel",)),
    )(x)

    out = out[:b, :n]
    return out[0] if squeeze else out


def _reference_probs(logits: jax.Array) -> jax.Array:
    p = jax.nn.softmax(logits.astype(jnp.float32), axis=-1)
    p = jnp.clip(p, 0.01)
    return p / jnp.sum(p, axis=-1, keepdims=True)


if __name__ == "__main__":
    N = 8   # discrete values per SimulationParameter
    B = 16  # batch of encoders processed in one kernel launch

    # Module __init__: logits = repeat(1/N, N), float32.
    logits_init = jnp.asarray(np.repeat(1.0 / N, N), dtype=jnp.float32)

    # Deterministic "trained" batch of encoders built from PRNGKey(0).
    key = jax.random.PRNGKey(0)
    logits_batch = logits_init[None, :] + jax.random.normal(key, (B, N), dtype=jnp.float32)

    ok = True
    for name, logits in (("init_single", logits_init), ("trained_batch", logits_batch)):
        out = jax.block_until_ready(onehot_encoder_forward(logits))
        ref = jax.block_until_ready(_reference_probs(logits))
        out_np, ref_np = np.asarray(out), np.asarray(ref)
        if out_np.shape != ref_np.shape:
            ok = False
            print(f"SHAPE MISMATCH ({name}): {out_np.shape} vs {ref_np.shape}")
            continue
        # Tolerances account for the EUP approximate-reciprocal normalizations.
        if not np.allclose(out_np, ref_np, atol=5e-4, rtol=5e-3):
            ok = False
            print(f"MISMATCH ({name}):\n{out_np}\nvs\n{ref_np}")
        sums = out_np.sum(axis=-1)
        if not np.allclose(sums, 1.0, atol=5e-3):
            ok = False
            print(f"SUM MISMATCH ({name}): {sums}")

    if ok:
        print("KERNEL_OK")
</pallas_src>

<mosaic_0001>
module attributes {stable_mosaic.version = 11 : i64} {
  func.func @_onehot_probs_kernel(%arg0: i32, %arg1: memref<8x128xf32, #tpu.memory_space<vmem>>, %arg2: memref<8x128xf32, #tpu.memory_space<vmem>>) attributes {dimension_semantics = [#tpu.dimension_semantics<parallel>], iteration_bounds = array<i64: 1>, scalar_prefetch = 0 : i64, scratch_operands = 0 : i64, tpu.core_type = #tpu.core_type<tc>, window_params = [{transform_indices = @transform_0, window_bounds = array<i64: 8, 128>}, {transform_indices = @transform_1, window_bounds = array<i64: 8, 128>}]} {
    %c0 = arith.constant 0 : index
    %c0_0 = arith.constant 0 : index
    %0 = vector.load %arg1[%c0, %c0_0] : memref<8x128xf32, #tpu.memory_space<vmem>>, vector<8x128xf32>
    %1 = tpu.iota {dimensions = array<i32: 1>} : vector<8x128xi32>
    %c8_i32 = arith.constant 8 : i32
    %2 = vector.broadcast %c8_i32 : i32 to vector<8x128xi32>
    %3 = arith.cmpi slt, %1, %2 : vector<8x128xi32>
    %cst = arith.constant -1.000000e+30 : f32
    %4 = vector.broadcast %cst : f32 to vector<8x128xf32>
    %5 = arith.select %3, %0, %4 : vector<8x128xi1>, vector<8x128xf32>
    %cst_1 = arith.constant dense<0xFF800000> : vector<8xf32>
    %6 = vector.multi_reduction <maximumf>, %5, %cst_1 [1] : vector<8x128xf32> to vector<8xf32>
    %7 = vector.shape_cast %6 : vector<8xf32> to vector<8x1xf32>
    %8 = vector.broadcast %7 : vector<8x1xf32> to vector<8x128xf32>
    %9 = arith.subf %5, %8 : vector<8x128xf32>
    %10 = math.exp %9 : vector<8x128xf32>
    %cst_2 = arith.constant dense<0.000000e+00> : vector<8xf32>
    %11 = vector.multi_reduction <add>, %10, %cst_2 [1] : vector<8x128xf32> to vector<8xf32>
    %12 = vector.shape_cast %11 : vector<8xf32> to vector<8x1xf32>
    %13 = tpu.reciprocal %12 {approx = true} : vector<8x1xf32> -> vector<8x1xf32>
    %14 = vector.broadcast %13 : vector<8x1xf32> to vector<8x128xf32>
    %15 = arith.mulf %10, %14 : vector<8x128xf32>
    %cst_3 = arith.constant 0.00999999977 : f32
    %16 = vector.broadcast %cst_3 : f32 to vector<8x128xf32>
    %17 = arith.maximumf %15, %16 : vector<8x128xf32>
    %cst_4 = arith.constant 0.000000e+00 : f32
    %18 = vector.broadcast %cst_4 : f32 to vector<8x128xf32>
    %19 = arith.select %3, %17, %18 : vector<8x128xi1>, vector<8x128xf32>
    %cst_5 = arith.constant dense<0.000000e+00> : vector<8xf32>
    %20 = vector.multi_reduction <add>, %19, %cst_5 [1] : vector<8x128xf32> to vector<8xf32>
    %21 = vector.shape_cast %20 : vector<8xf32> to vector<8x1xf32>
    %22 = tpu.reciprocal %21 {approx = true} : vector<8x1xf32> -> vector<8x1xf32>
    %23 = vector.broadcast %22 : vector<8x1xf32> to vector<8x128xf32>
    %24 = arith.mulf %19, %23 : vector<8x128xf32>
    %c0_6 = arith.constant 0 : index
    %c0_7 = arith.constant 0 : index
    %25 = vector.load %arg2[%c0_6, %c0_7] : memref<8x128xf32, #tpu.memory_space<vmem>>, vector<8x128xf32>
    tpu.vector_store %arg2[%c0_6, %c0_7], %24 {strides = array<i32>} : memref<8x128xf32, #tpu.memory_space<vmem>>, vector<8x128xf32>,
    return
  }
  func.func @transform_0(%arg0: i32) -> (i32, i32) {
    %c0_i32 = arith.constant 0 : i32
    %c0_i32_0 = arith.constant 0 : i32
    return %arg0, %c0_i32 : i32, i32
  }
  func.func @transform_1(%arg0: i32) -> (i32, i32) {
    %c0_i32 = arith.constant 0 : i32
    %c0_i32_0 = arith.constant 0 : i32
    return %arg0, %c0_i32 : i32, i32
  }
}

</mosaic_0001>

<bundles_post_ra>
// kernel: tpu_custom_call.1
= control target key start
LH: loop header
LB: loop body
LE: loop exit
PB: predicated region body
PF: predicated region fallthrough
CT: control target
= control target key end

     0   :  { %6 = vsyncpa [#allocation3], 0  ;;  %s149_s0 = inlined_call_operand.hbm [shape: f32[8,128], index: 0, kind: input, shape index: {}]   ;;  %s150_s1 = inlined_call_operand.hbm [shape: f32[8,128], index: 1, kind: output, shape index: {}]  }
   0x1   :  { %7 = vsyncpa [#allocation4], 0  ;;  %s113_s6 = smov [#allocation2]   ;;  %s65_s10 = scalar_lea.hbm %s149_s0, 128 }
   0x2   :  { %s14_s7 = sshll.u32 %s113_s6, 4  ;;  %p66_p0 = scmp.ne.s32.totalorder %s149_s0, %s65_s10  ;;  %s15_s7 = int_to_ptr.vmem [resolvable:$true] %s14_s7 }
   0x3   :  { %p69_p1 = scmp.lt.u32.totalorder %s65_s10, %s149_s0 }
   0x5   :  { %p71_p2 = pnand %p69_p1, %p66_p0 }
   0x7   :  { %74 = shalt.err (!%p71_p2)
}
   0x8   :  { %s75_s15 = scalar_lea.vmem %s15_s7, 128  ;;  %p80_p4 = scmp.lt.s32.totalorder %s15_s7, %s15_s7 }
   0x9   :  { %p76_p3 = scmp.ne.s32.totalorder %s15_s7, %s75_s15  ;;  %p81_p5 = scmp.lt.s32.totalorder %s75_s15, %s75_s15 }
   0xb   :  { %p82_p6 = por %p81_p5, %p80_p4 }
   0xd   :  { %p83_p7 = pnand %p82_p6, %p76_p3 }
   0xf   :  { %86 = shalt.err (!%p83_p7)
}
  0x10   :  { %17 = dma.hbm_to_vmem [thread:$0]  %s149_s0, 128, %s15_s7, [#allocation3]  }
  0x11   :  { %109 = dma.done.wait [#allocation3], 128  }
  0x12   :  { %110 = vsyncadd [#allocation3], 4294967168  ;;  %v22_v0 = vlaneseq  ;;  %v21_v2 = vld [vmem:[#allocation2] sm:$0xff]  ;;  %s114_s0 = smov [#allocation5]  }
  0x13   :  { %s48_s18 = sshll.u32 %s114_s0, 4  ;;  %s49_s18 = int_to_ptr.vmem [resolvable:$true] %s48_s18 }
  0x14   :  { %v23_v1 = vand.u32 127, %v22_v0  ;;  %s87_s19 = scalar_lea.vmem %s49_s18, 128  ;;  %p92_p9 = scmp.lt.s32.totalorder %s49_s18, %s49_s18 }
  0x15   :  { %p88_p8 = scmp.ne.s32.totalorder %s49_s18, %s87_s19  ;;  %p93_p10 = scmp.lt.s32.totalorder %s87_s19, %s87_s19 }
  0x16   :  { %vm24_vm0 = vcmp.lt.s32.totalorder %v23_v1, 8 }
  0x17   :  { %v25_v3 = vsel %vm24_vm0, %v21_v2, -1e+30  ;;  %p94_p11 = por %p93_p10, %p92_p9 }
  0x18   :  { %26 = vmax.xlane.f32.xlu0 %v25_v3 }
  0x19   :  { %p95_p12 = pnand %p94_p11, %p88_p8 }
  0xa5   :  { %v27_v4 = vpop.xlane.xlu0 %26 }
  0xa6   :  { %v28_v5 = vsub.f32 %v25_v3, %v27_v4 }
  0xa8   :  { %v29_v6 = vmul.f32 1.442695, %v28_v5 }
  0xaa   :  { %59 = vpow2.f32 %v29_v6 }
  0xb4   :  { %v60_v7 = vpop.eup %59 }
  0xb5   :  { %31 = vadd.xlane.f32.xlu0 %v60_v7 }
 0x142   :  { %v32_v8 = vpop.xlane.xlu0 %31 }
 0x143   :  { %61 = vrcp.f32 %v32_v8 }
 0x14d   :  { %v62_v9 = vpop.eup %61 }
 0x14e   :  { %v34_v10 = vmul.f32 %v62_v9, %v60_v7 }
 0x150   :  { %v35_v11 = vmax.f32 %v34_v10, 0.01 }
 0x152   :  { %v36_v12 = vsel %vm24_vm0, %v35_v11, 0.0 }
 0x153   :  { %37 = vadd.xlane.f32.xlu1 %v36_v12 }
 0x1e0   :  { %v38_v13 = vpop.xlane.xlu1 %37 }
 0x1e1   :  { %63 = vrcp.f32 %v38_v13 }
 0x1eb   :  { %v64_v14 = vpop.eup %63 }
 0x1ec   :  { %v40_v15 = vmul.f32 %v64_v14, %v36_v12 }
 0x1ee   :  { %41 = vst [vmem:[#allocation5] sm:$0xff] %v40_v15 }
 0x1ef   :  { %98 = shalt.err (!%p95_p12)
}
 0x1f0   :  { %s99_s22 = scalar_lea.hbm %s150_s1, 128 }
 0x1f1   :  { %p100_p13 = scmp.ne.s32.totalorder %s150_s1, %s99_s22  ;;  %p103_p0 = scmp.lt.u32.totalorder %s99_s22, %s150_s1 }
 0x1f3   :  { %p105_p1 = pnand %p103_p0, %p100_p13 }
 0x1f5   :  { %108 = shalt.err (!%p105_p1)
}
 0x1f6   :  { %51 = dma.vmem_to_hbm [thread:$0]  %s49_s18, 128, %s150_s1, [#allocation4]  }
 0x1f7   :  { %111 = dma.done.wait [#allocation4], 128  }
 0x1f8   :  { %112 = vsyncadd [#allocation4], 4294967168 }
 0x1f9   :  { %55 = vsyncpa [#allocation3], 1 }
 0x1fa   :  { %56 = vsyncpa [#allocation4], 1 }

</bundles_post_ra>
